<compile_context>
chip_gen: v7x
topology: tpu7x:2x2x1
jax: 0.10.0
libtpu: 0.0.40
codegen_flags: <defaults>
</compile_context>

<pallas_src>
import functools

import jax
import jax.numpy as jnp
from jax import lax
from jax.experimental import pallas as pl
from jax.experimental.pallas import tpu as pltpu

NC_PAD = 32        # padded class buckets (>= n_classes + ignore + pad = n_classes + 2)
R_PAD = 32         # padded prototype rows per sample (>= n_classes + 1)
P_TILE_MAX = 8192  # pixel-tile size; 19ch x 8192px f32 block ~0.6 MiB per buffer


def _round_up(x, m):
    return ((x + m - 1) // m) * m


# --------- kernel 1: per-class normalized-feature sums + pixel counts ---------
def _proto_kernel(x_ref, l_ref, s_ref, c_ref, acc_s, acc_c, *, n_classes):
    t = pl.program_id(2)

    @pl.when(t == 0)
    def _init():
        acc_s[...] = jnp.zeros_like(acc_s)
        acc_c[...] = jnp.zeros_like(acc_c)

    # per-pixel L2 normalization over channels (F.normalize(emb_q, dim=1));
    # channels live in sublanes, pixels in lanes.  rsqrt -> EUP slot; clamp at
    # eps^2 = 1e-24 to preserve F.normalize(eps=1e-12) semantics.
    x = x_ref[0].astype(jnp.float32)                        # (C, PT)
    sumsq = jnp.sum(x * x, axis=0, keepdims=True)           # (1, PT)
    xn = (x * lax.rsqrt(jnp.maximum(sumsq, 1e-24))).astype(jnp.bfloat16)

    lbl = l_ref[0]                                          # (1, PT) lane-dense
    lbl = jnp.where(lbl == 255, n_classes, lbl)             # ignore -> bucket n_classes
    cls = lax.broadcasted_iota(jnp.int32, (NC_PAD, lbl.shape[-1]), 0)
    ones = jnp.where(cls == lbl, 1.0, 0.0)                  # (NC_PAD, PT) f32 one-hot

    # per-class normalized-feature sums: one-hot @ xn^T (contract pixel/lane axis)
    acc_s[...] += lax.dot_general(ones.astype(jnp.bfloat16), xn,
                                  (((1,), (1,)), ((), ())),
                                  preferred_element_type=jnp.float32)
    # exact per-class pixel counts (f32 accumulation; bf16 would round past 256)
    acc_c[...] += jnp.sum(ones, axis=-1, keepdims=True)

    @pl.when(t == pl.num_programs(2) - 1)
    def _fin():
        s_ref[0, 0] = acc_s[...]
        c_ref[0, 0] = acc_c[...]


def _class_sums(x, lbl, n_classes, p_tile, g_split):
    B, C, P_pad = x.shape
    n_pt = P_pad // (p_tile * g_split)
    kernel = functools.partial(_proto_kernel, n_classes=n_classes)
    # TODO(synk): pipeline_mode=pl.Buffered(3) on the x spec is a marginal v5e
    # win; left at the default double-buffering for robustness.
    return pl.pallas_call(
        kernel,
        out_shape=(jax.ShapeDtypeStruct((B, g_split, NC_PAD, C), jnp.float32),
                   jax.ShapeDtypeStruct((B, g_split, NC_PAD, 1), jnp.float32)),
        grid_spec=pltpu.PrefetchScalarGridSpec(
            num_scalar_prefetch=0,
            grid=(B, g_split, n_pt),
            in_specs=[
                pl.BlockSpec((1, C, p_tile), lambda b, g, t: (b, 0, g * n_pt + t)),
                pl.BlockSpec((1, 1, p_tile), lambda b, g, t: (b, 0, g * n_pt + t)),
            ],
            out_specs=[
                pl.BlockSpec((1, 1, NC_PAD, C), lambda b, g, t: (b, g, 0, 0)),
                pl.BlockSpec((1, 1, NC_PAD, 1), lambda b, g, t: (b, g, 0, 0)),
            ],
            scratch_shapes=[pltpu.VMEM((NC_PAD, C), jnp.float32),
                            pltpu.VMEM((NC_PAD, 1), jnp.float32)]),
        compiler_params=pltpu.CompilerParams(
            dimension_semantics=("parallel", "parallel", "arbitrary"),
            vmem_limit_bytes=32 * 1024 * 1024),
    )(x, lbl)


# ----- kernel 2: single-step  normalize(emb_k) + logits + cross-entropy -------
def _ce_kernel(res_ref, ek_ref, tgt_ref, w_ref, out_ref, *, inv_tau):
    # F.normalize(emb_k, dim=-1), computed once, in f32 (tiny)
    ek = ek_ref[...].astype(jnp.float32)                    # (K, D)
    ekn = ek * lax.rsqrt(jnp.maximum(
        jnp.sum(ek * ek, axis=-1, keepdims=True), 1e-24))

    # all B*R_PAD prototype rows in one MXU matmul (f32 operands, f32 accumulate)
    logits = lax.dot_general(res_ref[...], ekn, (((1,), (1,)), ((), ())),
                             preferred_element_type=jnp.float32) * inv_tau

    m = jnp.max(logits, axis=-1, keepdims=True)
    lse = m + jnp.log(jnp.sum(jnp.exp(logits - m), axis=-1, keepdims=True))
    col = lax.broadcasted_iota(jnp.int32, logits.shape, 1)
    picked = jnp.sum(jnp.where(col == tgt_ref[...], logits, 0.0),
                     axis=-1, keepdims=True)                # (B*R_PAD, 1)
    # per-row weight already folds the valid-row mask, 1/R and 1/B
    out_ref[...] = jnp.sum((lse - picked) * w_ref[...], axis=0, keepdims=True)


# ----------------------------------- wrapper ----------------------------------
@functools.partial(jax.jit, static_argnames=("tau", "n_classes"))
def _contrastive_loss_impl(emb_k, emb_q, labels, *, tau, n_classes):
    B, C, H, W = emb_q.shape
    K, D = emb_k.shape
    assert labels.shape[0] == B, 'mismatch on emb_q and labels shapes!'
    # the reference's res_raw.view(-1, n_classes) / final matmul imply these:
    assert C == n_classes and D == n_classes and K >= n_classes
    assert n_classes + 2 <= NC_PAD and n_classes + 1 <= R_PAD

    P = H * W
    NC = n_classes + 1                                      # real classes + ignore bucket

    # ---- kernel 1: per-class normalized-feature sums + counts ----------------
    # channels stay in sublanes: (B, C, P) is a pure reshape of NCHW, read as
    # f32 straight from HBM (no transpose / lane-pad / cast pre-pass).
    p_tile = min(P_TILE_MAX, _round_up(P, 128))
    # split the pixel axis 2-way for megacore only when the batch alone can't
    # feed both TensorCores and there is more than one tile of pixels.
    g_split = 2 if (B % 2 == 1 and P > p_tile) else 1
    P_pad = _round_up(P, p_tile * g_split)

    x = jnp.pad(emb_q.reshape(B, C, P), ((0, 0), (0, 0), (0, P_pad - P)))
    lbl = jnp.pad(labels.astype(jnp.int32).reshape(B, 1, P),
                  ((0, 0), (0, 0), (0, P_pad - P)),
                  constant_values=n_classes + 1)            # pad pixels -> unused bucket

    sums_g, cnts_g = _class_sums(x, lbl, n_classes, p_tile, g_split)
    sums = jnp.sum(sums_g, axis=1)                          # (B, NC_PAD, C)
    counts = jnp.sum(cnts_g, axis=1)[:, :NC, 0]             # (B, NC) exact ints
    fsums = sums[:, :NC, :]                                 # (B, NC, C)

    # ---- fixed-shape on-device glue (torch.unique / buggy reshape) -----------
    # TODO(synk): the data-dependent unique/return_inverse/.view(-1, n_classes)
    # glue stays in plain XLA (fixed padded shapes) -- no dynamic-shape
    # primitive in TPU Pallas.
    present = counts > 0.0
    means = jnp.where(present[..., None],
                      fsums / jnp.maximum(counts, 1.0)[..., None], 0.0)

    presi = present.astype(jnp.int32)
    rank = jnp.cumsum(presi, axis=1) - presi                # exclusive rank (sorted order)
    U = jnp.sum(presi, axis=1)                              # #unique labels (incl. ignore)
    rows = jnp.sum(presi[:, :n_classes], axis=1)            # R = #rows after the drop

    # compact[b, u, :] = mean feature of the class with rank u (sorted unique order)
    sel = (present[:, None, :] &
           (rank[:, None, :] == jnp.arange(NC)[None, :, None])).astype(jnp.float32)
    compact = jnp.einsum('buk,bkc->buc', sel, means)        # (B, NC, C)
    cls_of_rank = jnp.einsum('buk,k->bu', sel,
                             jnp.arange(NC, dtype=jnp.float32)).astype(jnp.int32)

    # faithful reproduction of res_raw(C, U).flatten().view(-1, n_classes):
    #   res_new[r, j] = res_raw[(r*nc+j)//U, (r*nc+j)%U] = compact[(r*nc+j)%U, (r*nc+j)//U]
    f = (jnp.arange(R_PAD)[:, None] * n_classes +
         jnp.arange(n_classes)[None, :]).astype(jnp.int32)  # (R_PAD, nc)
    U_safe = jnp.maximum(U, 1)[:, None, None]
    c_idx = jnp.minimum(f[None] // U_safe, n_classes - 1)
    u_idx = f[None] % U_safe
    b_idx = jnp.arange(B)[:, None, None]
    res_new = compact[b_idx, u_idx, c_idx]                  # (B, R_PAD, nc) f32

    # per-row targets (= sorted label_list) and weights (valid mask / R / B)
    tgt = jnp.pad(cls_of_rank, ((0, 0), (0, R_PAD - NC)))   # (B, R_PAD)
    valid = jnp.arange(R_PAD)[None, :] < rows[:, None]
    w = jnp.where(valid,
                  1.0 / jnp.maximum(rows, 1)[:, None].astype(jnp.float32),
                  0.0) / jnp.float32(B)

    # ---- kernel 2: single-step logits + masked cross-entropy -----------------
    loss = pl.pallas_call(
        functools.partial(_ce_kernel, inv_tau=float(1.0 / tau)),
        out_shape=jax.ShapeDtypeStruct((1, 1), jnp.float32),
    )(res_new.reshape(B * R_PAD, n_classes),
      emb_k.astype(jnp.float32),
      tgt.reshape(B * R_PAD, 1),
      w.reshape(B * R_PAD, 1))
    return loss[0, 0]


def contrastive_loss(emb_k, emb_q, labels, epoch=0, tau=0.1, n_classes=19):
    del epoch  # unused by the reference forward
    return _contrastive_loss_impl(emb_k, emb_q, labels,
                                  tau=float(tau), n_classes=int(n_classes))


# ------------------------------------ main -------------------------------------
if __name__ == "__main__":
    n_classes = 19
    B, C, H, W = 2, n_classes, 16, 16     # module semantics require C == n_classes
    K = n_classes                          # feature bank: one row per class

    key = jax.random.PRNGKey(0)
    k1, k2, k3 = jax.random.split(key, 3)
    emb_k = jax.random.normal(k1, (K, n_classes), jnp.float32)
    emb_q = jax.random.normal(k2, (B, C, H, W), jnp.float32)
    labels = jax.random.randint(k3, (B, H, W), 0, n_classes).astype(jnp.int32)
    labels = labels.at[:, :2, :].set(255)  # exercise the 255-ignore path

    loss = contrastive_loss(emb_k, emb_q, labels, epoch=0, tau=0.1,
                            n_classes=n_classes)
    loss = jax.block_until_ready(loss)
    assert bool(jnp.isfinite(loss)), loss
    print("KERNEL_OK")
</pallas_src>

<mosaic_0001>
module attributes {stable_mosaic.version = 11 : i64} {
  func.func private @main(%arg0: i32) attributes {dimension_semantics = [#tpu.dimension_semantics<core_parallel>], iteration_bounds = array<i64: 2>, tpu.core_type = #tpu.core_type<sc_scalar_subcore>, window_params = []} {
    return
  }
}

module attributes {stable_mosaic.version = 11 : i64} {
  func.func private @main(%arg0: i32) attributes {dimension_semantics = [#tpu.dimension_semantics<core_parallel>], iteration_bounds = array<i64: 2>, tpu.core_type = #tpu.core_type<sc_scalar_subcore>, window_params = []} {
    return
  }
}

module attributes {stable_mosaic.version = 11 : i64} {
  func.func @_proto_kernel(%arg0: i32, %arg1: i32, %arg2: i32, %arg3: memref<1x19x256xf32, #tpu.memory_space<vmem>>, %arg4: memref<1x1x256xi32, #tpu.memory_space<vmem>>, %arg5: memref<1x1x32x19xf32, #tpu.memory_space<vmem>>, %arg6: memref<1x1x32x1xf32, #tpu.memory_space<vmem>>, %arg7: memref<32x19xf32, #tpu.memory_space<vmem>>, %arg8: memref<32x1xf32, #tpu.memory_space<vmem>>) attributes {dimension_semantics = [#tpu.dimension_semantics<parallel>, #tpu.dimension_semantics<parallel>, #tpu.dimension_semantics<arbitrary>], iteration_bounds = array<i64: 2, 1, 1>, scalar_prefetch = 0 : i64, scratch_operands = 2 : i64, tpu.core_type = #tpu.core_type<tc>, window_params = [{transform_indices = @transform_0, window_bounds = array<i64: 1, 19, 256>}, {transform_indices = @transform_1, window_bounds = array<i64: 1, 1, 256>}, {transform_indices = @transform_2, window_bounds = array<i64: 1, 1, 32, 19>}, {transform_indices = @transform_3, window_bounds = array<i64: 1, 1, 32, 1>}]} {
    %c0_i32 = arith.constant 0 : i32
    %0 = arith.cmpi eq, %arg2, %c0_i32 : i32
    %1 = arith.extui %0 : i1 to i32
    %c0_i32_0 = arith.constant 0 : i32
    %2 = arith.cmpi ne, %1, %c0_i32_0 : i32
    scf.if %2 {
      %cst_21 = arith.constant 0.000000e+00 : f32
      %39 = vector.broadcast %cst_21 : f32 to vector<32x19xf32>
      %c0_22 = arith.constant 0 : index
      %c0_23 = arith.constant 0 : index
      %40 = vector.load %arg7[%c0_22, %c0_23] : memref<32x19xf32, #tpu.memory_space<vmem>>, vector<32x19xf32>
      tpu.vector_store %arg7[%c0_22, %c0_23], %39 {strides = array<i32>} : memref<32x19xf32, #tpu.memory_space<vmem>>, vector<32x19xf32>,
      %cst_24 = arith.constant 0.000000e+00 : f32
      %41 = vector.broadcast %cst_24 : f32 to vector<32x1xf32>
      %c0_25 = arith.constant 0 : index
      %c0_26 = arith.constant 0 : index
      %42 = vector.load %arg8[%c0_25, %c0_26] : memref<32x1xf32, #tpu.memory_space<vmem>>, vector<32x1xf32>
      tpu.vector_store %arg8[%c0_25, %c0_26], %41 {strides = array<i32>} : memref<32x1xf32, #tpu.memory_space<vmem>>, vector<32x1xf32>,
    } else {
    }
    %c0 = arith.constant 0 : index
    %c0_1 = arith.constant 0 : index
    %c0_2 = arith.constant 0 : index
    %3 = vector.load %arg3[%c0, %c0_1, %c0_2] : memref<1x19x256xf32, #tpu.memory_space<vmem>>, vector<1x19x256xf32>
    %4 = vector.shape_cast %3 : vector<1x19x256xf32> to vector<19x256xf32>
    %5 = arith.mulf %4, %4 : vector<19x256xf32>
    %cst = arith.constant dense<0.000000e+00> : vector<256xf32>
    %6 = vector.multi_reduction <add>, %5, %cst [0] : vector<19x256xf32> to vector<256xf32>
    %7 = vector.shape_cast %6 : vector<256xf32> to vector<1x256xf32>
    %cst_3 = arith.constant 1.000000e-24 : f32
    %8 = vector.broadcast %cst_3 : f32 to vector<1x256xf32>
    %9 = arith.maximumf %7, %8 : vector<1x256xf32>
    %10 = math.rsqrt %9 : vector<1x256xf32>
    %11 = vector.broadcast %10 : vector<1x256xf32> to vector<19x256xf32>
    %12 = arith.mulf %4, %11 : vector<19x256xf32>
    %13 = arith.truncf %12 : vector<19x256xf32> to vector<19x256xbf16>
    %c0_4 = arith.constant 0 : index
    %c0_5 = arith.constant 0 : index
    %c0_6 = arith.constant 0 : index
    %14 = vector.load %arg4[%c0_4, %c0_5, %c0_6] : memref<1x1x256xi32, #tpu.memory_space<vmem>>, vector<1x1x256xi32>
    %15 = vector.shape_cast %14 : vector<1x1x256xi32> to vector<1x256xi32>
    %c255_i32 = arith.constant 255 : i32
    %16 = vector.broadcast %c255_i32 : i32 to vector<1x256xi32>
    %17 = arith.cmpi eq, %15, %16 : vector<1x256xi32>
    %c19_i32 = arith.constant 19 : i32
    %18 = vector.broadcast %c19_i32 : i32 to vector<1x256xi32>
    %19 = arith.select %17, %18, %15 : vector<1x256xi1>, vector<1x256xi32>
    %20 = tpu.iota {dimensions = array<i32: 0>} : vector<32x256xi32>
    %21 = vector.broadcast %19 : vector<1x256xi32> to vector<32x256xi32>
    %22 = arith.cmpi eq, %20, %21 : vector<32x256xi32>
    %cst_7 = arith.constant 1.000000e+00 : f32
    %cst_8 = arith.constant 0.000000e+00 : f32
    %23 = vector.broadcast %cst_7 : f32 to vector<32x256xf32>
    %24 = vector.broadcast %cst_8 : f32 to vector<32x256xf32>
    %25 = arith.select %22, %23, %24 : vector<32x256xi1>, vector<32x256xf32>
    %c0_9 = arith.constant 0 : index
    %c0_10 = arith.constant 0 : index
    %26 = vector.load %arg7[%c0_9, %c0_10] : memref<32x19xf32, #tpu.memory_space<vmem>>, vector<32x19xf32>
    %27 = arith.truncf %25 : vector<32x256xf32> to vector<32x256xbf16>
    %cst_11 = arith.constant dense<0.000000e+00> : vector<32x19xf32>
    %28 = tpu.matmul %27, %13, %cst_11 {dimension_numbers = #tpu.dot_dimension_numbers<[1], [1], [0], [0], [0, 0, 1, 0], [], []>} : vector<32x256xbf16>, vector<19x256xbf16>, vector<32x19xf32> -> vector<32x19xf32>
    %29 = arith.addf %26, %28 : vector<32x19xf32>
    %c0_12 = arith.constant 0 : index
    %c0_13 = arith.constant 0 : index
    %30 = vector.load %arg7[%c0_12, %c0_13] : memref<32x19xf32, #tpu.memory_space<vmem>>, vector<32x19xf32>
    tpu.vector_store %arg7[%c0_12, %c0_13], %29 {strides = array<i32>} : memref<32x19xf32, #tpu.memory_space<vmem>>, vector<32x19xf32>,
    %c0_14 = arith.constant 0 : index
    %c0_15 = arith.constant 0 : index
    %31 = vector.load %arg8[%c0_14, %c0_15] : memref<32x1xf32, #tpu.memory_space<vmem>>, vector<32x1xf32>
    %cst_16 = arith.constant dense<0.000000e+00> : vector<32xf32>
    %32 = vector.multi_reduction <add>, %25, %cst_16 [1] : vector<32x256xf32> to vector<32xf32>
    %33 = vector.shape_cast %32 : vector<32xf32> to vector<32x1xf32>
    %34 = arith.addf %31, %33 : vector<32x1xf32>
    %c0_17 = arith.constant 0 : index
    %c0_18 = arith.constant 0 : index
    %35 = vector.load %arg8[%c0_17, %c0_18] : memref<32x1xf32, #tpu.memory_space<vmem>>, vector<32x1xf32>
    tpu.vector_store %arg8[%c0_17, %c0_18], %34 {strides = array<i32>} : memref<32x1xf32, #tpu.memory_space<vmem>>, vector<32x1xf32>,
    %c0_i32_19 = arith.constant 0 : i32
    %36 = arith.cmpi eq, %arg2, %c0_i32_19 : i32
    %37 = arith.extui %36 : i1 to i32
    %c0_i32_20 = arith.constant 0 : i32
    %38 = arith.cmpi ne, %37, %c0_i32_20 : i32
    scf.if %38 {
      %c0_21 = arith.constant 0 : index
      %c0_22 = arith.constant 0 : index
      %39 = vector.load %arg7[%c0_21, %c0_22] : memref<32x19xf32, #tpu.memory_space<vmem>>, vector<32x19xf32>
      %c0_23 = arith.constant 0 : index
      %c0_24 = arith.constant 0 : index
      %c0_25 = arith.constant 0 : index
      %c0_26 = arith.constant 0 : index
      %40 = vector.load %arg5[%c0_23, %c0_24, %c0_25, %c0_26] : memref<1x1x32x19xf32, #tpu.memory_space<vmem>>, vector<1x1x32x19xf32>
      %41 = vector.shape_cast %40 : vector<1x1x32x19xf32> to vector<32x19xf32>
      %42 = vector.shape_cast %39 : vector<32x19xf32> to vector<1x1x32x19xf32>
      tpu.vector_store %arg5[%c0_23, %c0_24, %c0_25, %c0_26], %42 {strides = array<i32>} : memref<1x1x32x19xf32, #tpu.memory_space<vmem>>, vector<1x1x32x19xf32>,
      %c0_27 = arith.constant 0 : index
      %c0_28 = arith.constant 0 : index
      %43 = vector.load %arg8[%c0_27, %c0_28] : memref<32x1xf32, #tpu.memory_space<vmem>>, vector<32x1xf32>
      %c0_29 = arith.constant 0 : index
      %c0_30 = arith.constant 0 : index
      %c0_31 = arith.constant 0 : index
      %c0_32 = arith.constant 0 : index
      %44 = vector.load %arg6[%c0_29, %c0_30, %c0_31, %c0_32] : memref<1x1x32x1xf32, #tpu.memory_space<vmem>>, vector<1x1x32x1xf32>
      %45 = vector.shape_cast %44 : vector<1x1x32x1xf32> to vector<32x1xf32>
      %46 = vector.shape_cast %43 : vector<32x1xf32> to vector<1x1x32x1xf32>
      tpu.vector_store %arg6[%c0_29, %c0_30, %c0_31, %c0_32], %46 {strides = array<i32>} : memref<1x1x32x1xf32, #tpu.memory_space<vmem>>, vector<1x1x32x1xf32>,
    } else {
    }
    return
  }
  func.func @transform_0(%arg0: i32, %arg1: i32, %arg2: i32) -> (i32, i32, i32) {
    %c1_i32 = arith.constant 1 : i32
    %0 = arith.muli %arg1, %c1_i32 : i32
    %1 = arith.addi %0, %arg2 : i32
    %c0_i32 = arith.constant 0 : i32
    %c0_i32_0 = arith.constant 0 : i32
    return %arg0, %c0_i32, %1 : i32, i32, i32
  }
  func.func @transform_1(%arg0: i32, %arg1: i32, %arg2: i32) -> (i32, i32, i32) {
    %c1_i32 = arith.constant 1 : i32
    %0 = arith.muli %arg1, %c1_i32 : i32
    %1 = arith.addi %0, %arg2 : i32
    %c0_i32 = arith.constant 0 : i32
    %c0_i32_0 = arith.constant 0 : i32
    return %arg0, %c0_i32, %1 : i32, i32, i32
  }
  func.func @transform_2(%arg0: i32, %arg1: i32, %arg2: i32) -> (i32, i32, i32, i32) {
    %c0_i32 = arith.constant 0 : i32
    %c0_i32_0 = arith.constant 0 : i32
    %c0_i32_1 = arith.constant 0 : i32
    return %arg0, %arg1, %c0_i32, %c0_i32_0 : i32, i32, i32, i32
  }
  func.func @transform_3(%arg0: i32, %arg1: i32, %arg2: i32) -> (i32, i32, i32, i32) {
    %c0_i32 = arith.constant 0 : i32
    %c0_i32_0 = arith.constant 0 : i32
    %c0_i32_1 = arith.constant 0 : i32
    return %arg0, %arg1, %c0_i32, %c0_i32_0 : i32, i32, i32, i32
  }
}

module attributes {stable_mosaic.version = 11 : i64} {
  func.func @_ce_kernel(%arg0: memref<64x19xf32, #tpu.memory_space<vmem>>, %arg1: memref<19x19xf32, #tpu.memory_space<vmem>>, %arg2: memref<64x1xi32, #tpu.memory_space<vmem>>, %arg3: memref<64x1xf32, #tpu.memory_space<vmem>>, %arg4: memref<1x1xf32, #tpu.memory_space<vmem>>) attributes {dimension_semantics = [], scalar_prefetch = 0 : i64, scratch_operands = 0 : i64, tpu.core_type = #tpu.core_type<tc>} {
    %c0 = arith.constant 0 : index
    %c0_0 = arith.constant 0 : index
    %0 = vector.load %arg1[%c0, %c0_0] : memref<19x19xf32, #tpu.memory_space<vmem>>, vector<19x19xf32>
    %1 = arith.mulf %0, %0 : vector<19x19xf32>
    %cst = arith.constant dense<0.000000e+00> : vector<19xf32>
    %2 = vector.multi_reduction <add>, %1, %cst [1] : vector<19x19xf32> to vector<19xf32>
    %3 = vector.shape_cast %2 : vector<19xf32> to vector<19x1xf32>
    %cst_1 = arith.constant 1.000000e-24 : f32
    %4 = vector.broadcast %cst_1 : f32 to vector<19x1xf32>
    %5 = arith.maximumf %3, %4 : vector<19x1xf32>
    %6 = math.rsqrt %5 : vector<19x1xf32>
    %7 = vector.broadcast %6 : vector<19x1xf32> to vector<19x19xf32>
    %8 = arith.mulf %0, %7 : vector<19x19xf32>
    %c0_2 = arith.constant 0 : index
    %c0_3 = arith.constant 0 : index
    %9 = vector.load %arg0[%c0_2, %c0_3] : memref<64x19xf32, #tpu.memory_space<vmem>>, vector<64x19xf32>
    %cst_4 = arith.constant dense<0.000000e+00> : vector<64x19xf32>
    %10 = tpu.matmul %9, %8, %cst_4 {dimension_numbers = #tpu.dot_dimension_numbers<[1], [1], [0], [0], [0, 0, 1, 0], [], []>} : vector<64x19xf32>, vector<19x19xf32>, vector<64x19xf32> -> vector<64x19xf32>
    %cst_5 = arith.constant 1.000000e+01 : f32
    %11 = vector.broadcast %cst_5 : f32 to vector<64x19xf32>
    %12 = arith.mulf %10, %11 : vector<64x19xf32>
    %cst_6 = arith.constant dense<0xFF800000> : vector<64xf32>
    %13 = vector.multi_reduction <maximumf>, %12, %cst_6 [1] : vector<64x19xf32> to vector<64xf32>
    %14 = vector.shape_cast %13 : vector<64xf32> to vector<64x1xf32>
    %15 = vector.broadcast %14 : vector<64x1xf32> to vector<64x19xf32>
    %16 = arith.subf %12, %15 : vector<64x19xf32>
    %17 = math.exp %16 : vector<64x19xf32>
    %cst_7 = arith.constant dense<0.000000e+00> : vector<64xf32>
    %18 = vector.multi_reduction <add>, %17, %cst_7 [1] : vector<64x19xf32> to vector<64xf32>
    %19 = vector.shape_cast %18 : vector<64xf32> to vector<64x1xf32>
    %20 = math.log %19 : vector<64x1xf32>
    %21 = arith.addf %14, %20 : vector<64x1xf32>
    %22 = tpu.iota {dimensions = array<i32: 1>} : vector<64x19xi32>
    %c0_8 = arith.constant 0 : index
    %c0_9 = arith.constant 0 : index
    %23 = vector.load %arg2[%c0_8, %c0_9] : memref<64x1xi32, #tpu.memory_space<vmem>>, vector<64x1xi32>
    %24 = vector.broadcast %23 : vector<64x1xi32> to vector<64x19xi32>
    %25 = arith.cmpi eq, %22, %24 : vector<64x19xi32>
    %cst_10 = arith.constant 0.000000e+00 : f32
    %26 = vector.broadcast %cst_10 : f32 to vector<64x19xf32>
    %27 = arith.select %25, %12, %26 : vector<64x19xi1>, vector<64x19xf32>
    %cst_11 = arith.constant dense<0.000000e+00> : vector<64xf32>
    %28 = vector.multi_reduction <add>, %27, %cst_11 [1] : vector<64x19xf32> to vector<64xf32>
    %29 = vector.shape_cast %28 : vector<64xf32> to vector<64x1xf32>
    %30 = arith.subf %21, %29 : vector<64x1xf32>
    %c0_12 = arith.constant 0 : index
    %c0_13 = arith.constant 0 : index
    %31 = vector.load %arg3[%c0_12, %c0_13] : memref<64x1xf32, #tpu.memory_space<vmem>>, vector<64x1xf32>
    %32 = arith.mulf %30, %31 : vector<64x1xf32>
    %cst_14 = arith.constant dense<0.000000e+00> : vector<1xf32>
    %33 = vector.multi_reduction <add>, %32, %cst_14 [0] : vector<64x1xf32> to vector<1xf32>
    %34 = vector.shape_cast %33 : vector<1xf32> to vector<1x1xf32>
    %c0_15 = arith.constant 0 : index
    %c0_16 = arith.constant 0 : index
    %35 = vector.load %arg4[%c0_15, %c0_16] : memref<1x1xf32, #tpu.memory_space<vmem>>, vector<1x1xf32>
    tpu.vector_store %arg4[%c0_15, %c0_16], %34 {strides = array<i32>} : memref<1x1xf32, #tpu.memory_space<vmem>>, vector<1x1xf32>,
    return
  }
}

</mosaic_0001>

<bundles_post_ra>
// kernel: _contrastive_loss_impl.2
= control target key start
LH: loop header
LB: loop body
LE: loop exit
PB: predicated region body
PF: predicated region fallthrough
CT: control target
= control target key end

     0   :  { %s752_s12 = smov 0   ;;  %s754_s13 = smov 0   ;;  %s939_s0 = inlined_call_operand.vmem [shape: f32[2,19,256], index: 0, kind: input, shape index: {}]   ;;  %s940_s1 = inlined_call_operand.vmem [shape: s32[2,1,256], index: 1, kind: input, shape index: {}]   ;;  %s941_s2 = inlined_call_operand.vmem [shape: f32[2,1,32,19], index: 2, kind: output, shape index: {0}]   ;;  %s942_s3 = inlined_call_operand.vmem [shape: f32[2,1,32,1], index: 3, kind: output, shape index: {1}]  }
   0x1   :  { %s756_s14 = smov 0  }
   0x2 LB: > { %s33_s15 = sadd.s32 1, %s724_s13  ;;  %p652_p0 = scmp.ge.s32.totalorder %s728_s14, 1  ;;  %s728_s14 = sphi %s756_s14, %s14_s14   ;;  %s724_s13 = sphi %s754_s13, %s944_s13   ;;  %s720_s12 = sphi %s752_s12, %s943_s12  }
   0x3   : > { %p35_p1 = scmp.ge.s32.totalorder %s33_s15, 2  ;;  %p194_p2 = scmp.lt.s32.totalorder %s728_s14, 3 }
   0x5   : > { %s946_s15 = smov (%p35_p1, %s33_s15), 0  ;;  %p195_p3 = pnand %p652_p0, %p194_p2 }
   0x6   : > { %p247_p4 = scmp.lt.s32.totalorder (!%p195_p3), %s720_s12, 1  ;;  %v349_v0 = vlaneseq (!%p195_p3)  ;;  %vm296_vm0 = vcmask (!%p195_p3), 7168   ;;  %v730_v1 = vmov (!%p195_p3), 0.0   ;;  %vm314_vm1 = vcmask (!%p195_p3), 1042432  }
   0x7   : > { %198 = sbr.rel (%p195_p3) target bundleno = 295 (0x127), region = 28  ;;  %299 = vst.msk [vmem:[#allocation3 + $0x10] sm:$0xff] (!%p195_p3), %vm296_vm0, %v730_v1  ;;  %297 = vst.msk [vmem:[#allocation3] sm:$0xff] (!%p195_p3), %vm296_vm0, %v730_v1  ;;  %v731_v33 = vmov (!%p195_p3), 1.0|1.0   ;;  %vm291_vm13 = vcmask (!%p195_p3), 154624  }
   0x8   : > { %298 = vst.msk [vmem:[#allocation3 + $0x8] sm:$0xff] (!%p195_p3), %vm296_vm0, %v730_v1  ;;  %300 = vst.msk [vmem:[#allocation3 + $0x18] sm:$0xff] (!%p195_p3), %vm296_vm0, %v730_v1  ;;  %v780_v2 = vshrl.u32 (!%p195_p3), %v349_v0, 7 }
   0x9   : > { %292 = vst.msk [vmem:[#allocation2] sm:$0xff] (!%p195_p3), %vm291_vm13, %v730_v1  ;;  %293 = vst.msk [vmem:[#allocation2 + $0x8] sm:$0xff] (!%p195_p3), %vm291_vm13, %v730_v1 }
   0xa   : > { %v356_v6 = vsub.s32 (!%p195_p3), 0, %v780_v2  ;;  %v360_v13 = vsub.s32 (!%p195_p3), 1, %v780_v2  ;;  %v817_v18 = vadd.s32 (!%p195_p3), 8, %v780_v2  ;;  %v821_v21 = vadd.s32 (!%p195_p3), 16, %v780_v2  ;;  %294 = vst.msk [vmem:[#allocation2 + $0x10] sm:$0xff] (!%p195_p3), %vm291_vm13, %v730_v1  ;;  %295 = vst.msk [vmem:[#allocation2 + $0x18] sm:$0xff] (!%p195_p3), %vm291_vm13, %v730_v1 }
   0xb   : > { %v825_v25 = vadd.s32 (!%p195_p3), 24, %v780_v2 }
   0xe   : > { %s948_s12 = smov (!%p247_p4, %s720_s12), 1 }
   0xf   : > { %s675_s16 = smul.u32 48, %s948_s12  ;;  %s654_s20 = sshll.u32 %s948_s12, 1 }
  0x10   : > { %s265_s23 = scalar_lea.vmem %s940_s1, %s654_s20  ;;  %s669_s24 = sshll.u32 %s948_s12, 5 }
  0x11   : > { %s254_s19 = scalar_lea.vmem %s939_s0, %s675_s16  ;;  %v346_v17 = vld [vmem:[%s265_s23] sm:$0x3]  ;;  %s285_s27 = scalar_lea.vmem %s942_s3, %s669_s24 }
  0x12   : > { %v787_v3 = vld [vmem:[%s254_s19 + $0x8] sm:$0xff]  ;;  %v789_v4 = vld [vmem:[%s254_s19 + $0x18] sm:$0xff]  ;;  %v803_v10 = vld [vmem:[%s254_s19] sm:$0xff]  ;;  %vm347_vm2 = vcmp.eq.s32.totalorder %v346_v17, 255  ;;  %s276_s30 = scalar_lea.vmem %s941_s2, %s669_s24 }
  0x13   : > { %v791_v5 = vld [vmem:[%s254_s19 + $0x28] sm:$0x7]  ;;  %v308_v7 = vmul.f32 %v787_v3, %v787_v3  ;;  %v310_v8 = vmul.f32 %v789_v4, %v789_v4  ;;  %v805_v11 = vld [vmem:[%s254_s19 + $0x10] sm:$0xff]  ;;  %v807_v12 = vld [vmem:[%s254_s19 + $0x20] sm:$0x7]  ;;  %v307_v14 = vmul.f32 %v803_v10, %v803_v10  ;;  %v348_v24 = vsel %vm347_vm2, 19, %v346_v17 }
  0x14   : > { %v312_v9 = vmul.f32 %v791_v5, %v791_v5  ;;  %v309_v15 = vmul.f32 %v805_v11, %v805_v11  ;;  %v311_v16 = vmul.f32 %v807_v12, %v807_v12  ;;  %v827_v27 = vrot.slane %v348_v24, %v356_v6 }
  0x15   : > { %v323_v19 = vadd.f32 %v310_v8, %v308_v7  ;;  %v361_v28 = vrot.slane %v348_v24, %v360_v13 }
  0x16   : > { %v324_v20 = vsel %vm314_vm1, %v312_v9, 0.0  ;;  %v313_v22 = vadd.f32 %v309_v15, %v307_v14  ;;  %v315_v23 = vsel %vm314_vm1, %v311_v16, 0.0  ;;  %vm362_vm8 = vcmp.eq.s32.totalorder %v780_v2, %v827_v27 }
  0x17   : > { %v325_v26 = vadd.f32 %v324_v20, %v323_v19  ;;  %vm363_vm3 = vcmp.eq.s32.totalorder %v780_v2, %v361_v28  ;;  %vm365_vm4 = vcmp.eq.s32.totalorder %v817_v18, %v361_v28  ;;  %vm367_vm5 = vcmp.eq.s32.totalorder %v821_v21, %v361_v28 }
  0x18   : > { %v316_v29 = vadd.f32 %v315_v23, %v313_v22  ;;  %vm659_vm6 = vmpackc.low %vm365_vm4, %vm363_vm3  ;;  %vm369_vm7 = vcmp.eq.s32.totalorder %v825_v25, %v361_v28  ;;  %vm364_vm9 = vcmp.eq.s32.totalorder %v817_v18, %v827_v27  ;;  %vm366_vm11 = vcmp.eq.s32.totalorder %v821_v21, %v827_v27  ;;  %v378_v21 = vld [vmem:[#allocation2] sm:$0xff]  ;;  %v380_v22 = vld [vmem:[#allocation2 + $0x10] sm:$0xff] }
  0x19   : > { %v326_v30 = vrot.slane %v325_v26, 4  ;;  %660 = vmatprep.mubr.msk.bf16.mxu0 %vm659_vm6, %v731_v33  ;;  %vm663_vm10 = vmpackc.low %vm369_vm7, %vm367_vm5  ;;  %vm368_vm12 = vcmp.eq.s32.totalorder %v825_v25, %v827_v27  ;;  %v375_v34 = vsel %vm367_vm5, 1.0, %v730_v1  ;;  %v374_v36 = vsel %vm366_vm11, 1.0, %v730_v1  ;;  %v379_v25 = vld [vmem:[#allocation2 + $0x8] sm:$0xff] }
  0x1a   : > { %v317_v31 = vrot.slane %v316_v29, 4  ;;  %664 = vmatprep.mubr.msk.bf16.mxu1 %vm663_vm10, %v731_v33  ;;  %v370_v37 = vsel %vm362_vm8, 1.0, %v730_v1  ;;  %v371_v38 = vsel %vm363_vm3, 1.0, %v730_v1  ;;  %v454_v40 = vadd.f32 %v375_v34, %v374_v36  ;;  %vm661_vm14 = vmpackc.low %vm364_vm9, %vm362_vm8 }
  0x1b   : > { %v327_v32 = vadd.f32 %v326_v30, %v325_v26  ;;  %v448_v41 = vadd.f32 %v371_v38, %v370_v37  ;;  %v376_v42 = vsel %vm368_vm12, 1.0, %v730_v1  ;;  %v377_v44 = vsel %vm369_vm7, 1.0, %v730_v1  ;;  %vm665_vm15 = vmpackc.low %vm368_vm12, %vm366_vm11  ;;  %v381_v26 = vld [vmem:[#allocation2 + $0x18] sm:$0xff] }
  0x1c   : > { %v318_v35 = vadd.f32 %v317_v31, %v316_v29  ;;  %v372_v45 = vsel %vm364_vm9, 1.0, %v730_v1  ;;  %v373_v46 = vsel %vm365_vm4, 1.0, %v730_v1  ;;  %455 = vadd.xlane.f32.xlu1 %v454_v40  ;;  %v457_v48 = vadd.f32 %v377_v44, %v376_v42  ;;  %v446_v1 = vld [vmem:[#allocation3 + $0x10] sm:$0xff] }
  0x1d   : > { %v328_v39 = vrot.slane %v327_v32, 2  ;;  %449 = vadd.xlane.f32.xlu0 %v448_v41  ;;  %v451_v49 = vadd.f32 %v373_v46, %v372_v45 }
  0x1e   : > { %v319_v43 = vrot.slane %v318_v35, 2 }
  0x1f   : > { %v329_v47 = vadd.f32 %v328_v39, %v327_v32 }
  0x20   : > { %v320_v50 = vadd.f32 %v319_v43, %v318_v35  ;;  %458 = vadd.xlane.f32.xlu1 %v457_v48 }
  0x21   : > { %v330_v51 = vrot.slane %v329_v47, 1  ;;  %452 = vadd.xlane.f32.xlu0 %v451_v49 }
  0x22   : > { %v321_v52 = vrot.slane %v320_v50, 1 }
  0x23   : > { %v331_v53 = vadd.f32 %v330_v51, %v329_v47 }
  0x24   : > { %v322_v54 = vadd.f32 %v321_v52, %v320_v50 }
  0x25   : > { %v333_v55 = vmax.f32 %v331_v53, 1e-24 }
  0x26   : > { %v332_v56 = vmax.f32 %v322_v54, 1e-24 }
  0x27   : > { %702 = vrsqrt.f32 %v333_v55 }
  0x28   : > { %704 = vrsqrt.f32 %v332_v56 }
  0x31   : > { %v703_v57 = vpop.eup %702 }
  0x32   : > { %v705_v58 = vpop.eup %704  ;;  %v337_v59 = vmul.f32 %v703_v57, %v787_v3  ;;  %v339_v60 = vmul.f32 %v703_v57, %v789_v4  ;;  %v341_v61 = vmul.f32 %v703_v57, %v791_v5  ;;  %v444_v4 = vld [vmem:[#allocation3] sm:$0xff] }
  0x33   : > { %v336_v62 = vmul.f32 %v705_v58, %v803_v10  ;;  %v338_v63 = vmul.f32 %v705_v58, %v805_v11  ;;  %v340_v8 = vmul.f32 %v705_v58, %v807_v12  ;;  %v447_v11 = vld [vmem:[#allocation3 + $0x18] sm:$0xff]  ;;  %v445_v12 = vld [vmem:[#allocation3 + $0x8] sm:$0xff] }
  0x34   : > { %v343_v0 = vpack.c.bf16 %v339_v60, %v337_v59  ;;  %v345_v6 = vpack.c.bf16 %v341_v61, %v341_v61 }
  0x35   : > { %v342_v7 = vpack.c.bf16 %v338_v63, %v336_v62  ;;  %v344_v3 = vpack.c.bf16 %v340_v8, %v340_v8 }
  0x36   : > { %386 = vmatprep.subr.bf16.mxu0 %v343_v0  ;;  %671 = vmatprep.subr.bf16.mxu1 %v343_v0 }
  0x37   : > { %387 = vmatpush1.bf16.xpose.msra.mxu0 %v342_v7  ;;  %673 = vmatpush1.bf16.xpose.msra.mxu1 %v342_v7 }
  0x38   : > { %388 = vmatprep.subr.bf16.mxu0 %v345_v6  ;;  %672 = vmatprep.subr.bf16.mxu1 %v345_v6 }
  0x3f   : > { %389 = vmatpush1.bf16.xpose.msra.mxu0 %v344_v3  ;;  %674 = vmatpush1.bf16.xpose.msra.mxu1 %v344_v3 }
  0x46   : > { %662 = vmatmul.mubr.msk.bf16.vlgmr.msra.gmra.mrb[0].mxu0 %vm661_vm14, %v731_v33  ;;  %666 = vmatmul.mubr.msk.bf16.vlgmr.msra.gmra.mrb[0].mxu1 %vm665_vm15, %v731_v33 }
  0xa9   : > { %v456_v2 = vpop.xlane.xlu1 %455 }
  0xaa   : > { %v450_v5 = vpop.xlane.xlu0 %449  ;;  %v462_v9 = vadd.f32 %v456_v2, %v446_v1 }
  0xab   : > { %v460_v10 = vadd.f32 %v450_v5, %v444_v4 }
  0xac   : > { %467 = vst.msk [vmem:[#allocation3 + $0x10] sm:$0xff] %vm296_vm0, %v462_v9 }
  0xad   : > { %465 = vst.msk [vmem:[#allocation3] sm:$0xff] %vm296_vm0, %v460_v10  ;;  %v459_v13 = vpop.xlane.xlu1 %458 }
  0xae   : > { %v453_v14 = vpop.xlane.xlu0 %452  ;;  %v463_v15 = vadd.f32 %v459_v13, %v447_v11 }
  0xaf   : > { %v461_v16 = vadd.f32 %v453_v14, %v445_v12 }
  0xb0   : > { %468 = vst.msk [vmem:[#allocation3 + $0x18] sm:$0xff] %vm296_vm0, %v463_v15 }
  0xb1   : > { %466 = vst.msk [vmem:[#allocation3 + $0x8] sm:$0xff] %vm296_vm0, %v461_v16 }
  0xb3   : > { %v482_v17 = vld [vmem:[#allocation3 + $0x10] sm:$0xff] }
  0xb4   : > { %v480_v18 = vld [vmem:[#allocation3] sm:$0xff]  ;;  %486 = vst.msk [vmem:[%s285_s27 + $0x10] sm:$0xff] %vm296_vm0, %v482_v17 }
  0xb5   : > { %484 = vst.msk [vmem:[%s285_s27] sm:$0xff] %vm296_vm0, %v480_v18 }
  0xb7   : > { %v483_v19 = vld [vmem:[#allocation3 + $0x18] sm:$0xff] }
  0xb8   : > { %v481_v20 = vld [vmem:[#allocation3 + $0x8] sm:$0xff]  ;;  %487 = vst.msk [vmem:[%s285_s27 + $0x18] sm:$0xff] %vm296_vm0, %v483_v19 }
  0xb9   : > { %485 = vst.msk [vmem:[%s285_s27 + $0x8] sm:$0xff] %vm296_vm0, %v481_v20 }
 0x119   : > { %v420_v23 = vpop.f32.mrb[0].mxu0  ;;  %v428_v24 = vpop.f32.mrb[0].mxu1 }
 0x11a   : > { %v435_v27 = vadd.f32 %v420_v23, %v378_v21  ;;  %v437_v28 = vadd.f32 %v428_v24, %v380_v22  ;;  %v422_v29 = vpop.f32.mrb[1].mxu0  ;;  %v430_v30 = vpop.f32.mrb[1].mxu1 }
 0x11b   : > { %v423_v31 = vpop.f32.mrb[2].mxu0  ;;  %v431_v32 = vpop.f32.mrb[2].mxu1 }
 0x11c   : > { %440 = vst.msk [vmem:[#allocation2] sm:$0xff] %vm291_vm13, %v435_v27  ;;  %442 = vst.msk [vmem:[#allocation2 + $0x10] sm:$0xff] %vm291_vm13, %v437_v28  ;;  %v436_v33 = vadd.f32 %v423_v31, %v379_v25  ;;  %v438_v34 = vadd.f32 %v431_v32, %v381_v26  ;;  %v425_v35 = vpop.f32.mrb[3].mxu0  ;;  %v433_v36 = vpop.f32.mrb[3].mxu1 }
 0x11e   : > { %441 = vst.msk [vmem:[#allocation2 + $0x8] sm:$0xff] %vm291_vm13, %v436_v33  ;;  %443 = vst.msk [vmem:[#allocation2 + $0x18] sm:$0xff] %vm291_vm13, %v438_v34 }
 0x123   : > { %v472_v37 = vld [vmem:[#allocation2] sm:$0xff]  ;;  %v474_v38 = vld [vmem:[#allocation2 + $0x10] sm:$0xff] }
 0x124   : > { %476 = vst.msk [vmem:[%s276_s30] sm:$0xff] %vm291_vm13, %v472_v37  ;;  %478 = vst.msk [vmem:[%s276_s30 + $0x10] sm:$0xff] %vm291_vm13, %v474_v38 }
 0x125   : > { %v473_v39 = vld [vmem:[#allocation2 + $0x8] sm:$0xff]  ;;  %v475_v40 = vld [vmem:[#allocation2 + $0x18] sm:$0xff] }
 0x126   : > { %477 = vst.msk [vmem:[%s276_s30 + $0x8] sm:$0xff] %vm291_vm13, %v473_v39  ;;  %479 = vst.msk [vmem:[%s276_s30 + $0x18] sm:$0xff] %vm291_vm13, %v475_v40 }
 0x127 PF: > { %s14_s14 = sadd.s32 1, %s728_s14   ;;  %s943_s12 = smov %s724_s13 }
 0x128   : > { %p11_p5 = scmp.ge.s32.totalorder %s14_s14, 4   ;;  %s944_s13 = smov %s946_s15 }
 0x12a   :  { %13 = sbr.rel (!%p11_p5) target bundleno = 2 (0x2), region = 81 }

// kernel: _contrastive_loss_impl.3
= control target key start
LH: loop header
LB: loop body
LE: loop exit
PB: predicated region body
PF: predicated region fallthrough
CT: control target
= control target key end

     0   :  { %vm24_vm0 = vcmask 154624   ;;  %vm31_vm1 = vcmask 149504   ;;  %s799_s0 = inlined_call_operand.vmem [shape: f32[64,19], index: 0, kind: input, shape index: {}]   ;;  %s800_s1 = inlined_call_operand.vmem [shape: f32[19,19], index: 1, kind: input, shape index: {}]   ;;  %s801_s2 = inlined_call_operand.vmem [shape: s32[64,1], index: 2, kind: input, shape index: {}]   ;;  %s802_s3 = inlined_call_operand.vmem [shape: f32[64,1], index: 3, kind: input, shape index: {}]   ;;  %s803_s4 = inlined_call_operand.hbm [shape: f32[1,1], index: 4, kind: output, shape index: {}]  }
   0x1   :  { %v18_v0 = vld [vmem:[%s800_s1] sm:$0xff]  ;;  %v19_v1 = vld [vmem:[%s800_s1 + $0x8] sm:$0xff]  ;;  %v20_v2 = vld [vmem:[%s800_s1 + $0x10] sm:$0x7] }
   0x2   :  { %v21_v3 = vmul.f32 %v18_v0, %v18_v0  ;;  %v22_v4 = vmul.f32 %v19_v1, %v19_v1  ;;  %v23_v5 = vmul.f32 %v20_v2, %v20_v2 }
   0x3   :  { %9 = vsyncpa [#allocation3], 0  ;;  %v44_v9 = vld [vmem:[%s799_s0] sm:$0xff]  ;;  %v546_v12 = vmov 0   ;;  %v45_v26 = vld [vmem:[%s799_s0 + $0x8] sm:$0xff]  ;;  %vm392_vm11 = vcmask 7168  }
   0x4   :  { %v25_v6 = vsel %vm24_vm0, %v21_v3, 0.0  ;;  %v32_v7 = vsel %vm31_vm1, %v23_v5, 0.0  ;;  %v28_v8 = vsel %vm24_vm0, %v22_v4, 0.0  ;;  %458 = vmatprep.mubr.msk.f32.mxu0 %vm24_vm0, %v44_v9  ;;  %v48_v10 = vld [vmem:[%s799_s0 + $0x20] sm:$0xff]  ;;  %482 = vset.pattern.permute.xlu1 %v546_v12  ;;  %vm471_vm2 = vmpackc.low %vm24_vm0, %vm24_vm0  ;;  %v49_v27 = vld [vmem:[%s799_s0 + $0x28] sm:$0xff]  ;;  %vm414_vm12 = vcmask 0  }
   0x5   :  { %26 = vadd.xlane.f32.xlu0 %v25_v6  ;;  %33 = vadd.xlane.f32.xlu1 %v32_v7  ;;  %v296_v11 = vld [vmem:[%s801_s2] sm:$0xff]  ;;  %v46_v28 = vld [vmem:[%s799_s0 + $0x10] sm:$0xff]  ;;  %v47_v30 = vld [vmem:[%s799_s0 + $0x18] sm:$0xff] }
   0x6   :  { %464 = vmatprep.mubr.msk.f32.mxu1 %vm24_vm0, %v48_v10  ;;  %483 = vset.pattern.permute.xlu0 %v546_v12  ;;  %v50_v29 = vld [vmem:[%s799_s0 + $0x30] sm:$0xff]  ;;  %v51_v31 = vld [vmem:[%s799_s0 + $0x38] sm:$0xff]  ;;  %v300_v54 = vld [vmem:[%s801_s2 + $0x20] sm:$0xff] }
   0x7   :  { %v298_v52 = vld [vmem:[%s801_s2 + $0x10] sm:$0xff]  ;;  %v299_v53 = vld [vmem:[%s801_s2 + $0x18] sm:$0xff]  ;;  %v297_v55 = vld [vmem:[%s801_s2 + $0x8] sm:$0xff] }
   0x8   :  { %v301_v58 = vld [vmem:[%s801_s2 + $0x28] sm:$0xff]  ;;  %v302_v61 = vld [vmem:[%s801_s2 + $0x30] sm:$0xff]  ;;  %v303_v62 = vld [vmem:[%s801_s2 + $0x38] sm:$0xff] }
   0x9   :  { %29 = vadd.xlane.f32.xlu0 %v28_v8 }
  0x16   :  { %305 = vperm.xlu1 %482, %v296_v11  }
  0x92   :  { %v27_v13 = vpop.xlane.xlu0 %26  ;;  %v34_v14 = vpop.xlane.xlu1 %33 }
  0x93   :  { %v35_v15 = vmax.f32 %v27_v13, 1e-24  ;;  %v37_v16 = vmax.f32 %v34_v14, 1e-24 }
  0x95   :  { %484 = vrsqrt.f32 %v35_v15 }
  0x96   :  { %v30_v17 = vpop.xlane.xlu0 %29  ;;  %486 = vrsqrt.f32 %v37_v16  ;;  %v684_v3 = vpop.permute.xlu1 %305 }
  0x97   :  { %v36_v18 = vmax.f32 %v30_v17, 1e-24 }
  0x99   :  { %488 = vrsqrt.f32 %v36_v18 }
  0x9f   :  { %v485_v19 = vpop.eup %484 }
  0xa0   :  { %v487_v20 = vpop.eup %486  ;;  %v41_v22 = vmul.f32 %v485_v19, %v18_v0  ;;  %v294_v19 = vlaneseq }
  0xa1   :  { %v43_v25 = vmul.f32 %v487_v20, %v20_v2 }
  0xa3   :  { %v489_v21 = vpop.eup %488 }
  0xa4   :  { %v42_v23 = vmul.f32 %v489_v21, %v19_v1 }
  0xa6   :  { %v470_v24 = vpack.c.bf16 %v42_v23, %v41_v22 }
  0xa8   :  { %472 = vmatprep.subr.msk.bf16.mxu0 %vm471_vm2, %v470_v24  ;;  %476 = vmatprep.subr.msk.bf16.mxu1 %vm471_vm2, %v470_v24 }
  0xa9   :  { %475 = vmatpush3.bf16.xpose.msk.msra.mxu0 %vm471_vm2, %v470_v24  ;;  %478 = vmatpush3.bf16.xpose.msk.msra.mxu1 %vm471_vm2, %v470_v24  ;;  %v704_v24 = vand.u32 127, %v294_v19 }
  0xaa   :  { %456 = vmatprep.subr.msk.mxu0 %vm24_vm0, %v43_v25  ;;  %477 = vmatprep.subr.msk.mxu1 %vm24_vm0, %v43_v25 }
  0xab   :  { %vm328_vm7 = vcmp.eq.s32.totalorder %v704_v24, %v684_v3 }
  0xb1   :  { %457 = vmatpush3.xpose.msk.msra.mxu0 %vm24_vm0, %v43_v25  ;;  %479 = vmatpush3.xpose.msk.msra.mxu1 %vm24_vm0, %v43_v25 }
  0xb4   :  { %459 = vmatmul.mubr.msk.f32.vlgmr.msra.gmra.mrb[0].mxu0 %vm24_vm0, %v45_v26  ;;  %465 = vmatmul.mubr.msk.f32.vlgmr.msra.gmra.mrb[0].mxu1 %vm24_vm0, %v49_v27 }
  0xb5   :  { %461 = vmatprep.mubr.msk.f32.mxu0 %vm24_vm0, %v46_v28  ;;  %467 = vmatprep.mubr.msk.f32.mxu1 %vm24_vm0, %v50_v29 }
  0xb8   :  { %462 = vmatmul.mubr.msk.f32.gmra.mrb[2].mxu0 %vm24_vm0, %v47_v30  ;;  %468 = vmatmul.mubr.msk.f32.gmra.mrb[2].mxu1 %vm24_vm0, %v51_v31 }
 0x187   :  { %v460_v32 = vpop.f32.mrb[0].mxu0  ;;  %v466_v33 = vpop.f32.mrb[0].mxu1 }
 0x188   :  { %v625_v34 = vmul.f32 10.0, %v460_v32  ;;  %v151_v35 = vpop.f32.mrb[1].mxu0  ;;  %v627_v36 = vmul.f32 10.0, %v466_v33  ;;  %v171_v37 = vpop.f32.mrb[1].mxu1 }
 0x189   :  { %v629_v38 = vmul.f32 10.0, %v151_v35  ;;  %v631_v39 = vmul.f32 10.0, %v171_v37 }
 0x18a   :  { %v201_v40 = vsel %vm24_vm0, %v625_v34, -inf  ;;  %v213_v44 = vsel %vm24_vm0, %v627_v36, -inf }
 0x18b   :  { %202 = vmax.xlane.f32.xlu0 %v201_v40  ;;  %v198_v41 = vsel %vm24_vm0, %v629_v38, -inf  ;;  %v463_v42 = vpop.f32.mrb[2].mxu0  ;;  %v469_v43 = vpop.f32.mrb[2].mxu1  ;;  %v210_v48 = vsel %vm24_vm0, %v631_v39, -inf }
 0x18c   :  { %199 = vmax.xlane.f32.xlu1 %v198_v41  ;;  %v639_v45 = vmul.f32 10.0, %v463_v42  ;;  %v161_v46 = vpop.f32.mrb[3].mxu0  ;;  %v181_v47 = vpop.f32.mrb[3].mxu1  ;;  %v643_v49 = vmul.f32 10.0, %v469_v43 }
 0x18d   :  { %v661_v56 = vmul.f32 10.0, %v161_v46  ;;  %v668_v59 = vmul.f32 10.0, %v181_v47 }
 0x18e   :  { %v207_v50 = vsel %vm24_vm0, %v639_v45, -inf  ;;  %v219_v51 = vsel %vm24_vm0, %v643_v49, -inf }
 0x18f   :  { %214 = vmax.xlane.f32.xlu0 %v213_v44  ;;  %v204_v57 = vsel %vm24_vm0, %v661_v56, -inf  ;;  %v216_v60 = vsel %vm24_vm0, %v668_v59, -inf }
 0x190   :  { %211 = vmax.xlane.f32.xlu1 %v210_v48 }
 0x193   :  { %208 = vmax.xlane.f32.xlu0 %v207_v50 }
 0x197   :  { %220 = vmax.xlane.f32.xlu0 %v219_v51 }
 0x1a1   :  { %311 = vperm.xlu1 %482, %v298_v52  }
 0x1a5   :  { %314 = vperm.xlu1 %482, %v299_v53  }
 0x1a9   :  { %317 = vperm.xlu1 %482, %v300_v54  }
 0x1ad   :  { %308 = vperm.xlu0 %483, %v297_v55  }
 0x1cd   :  { %205 = vmax.xlane.f32.xlu1 %v204_v57 }
 0x1de   :  { %320 = vperm.xlu1 %482, %v301_v58  }
 0x202   :  { %217 = vmax.xlane.f32.xlu1 %v216_v60 }
 0x213   :  { %323 = vperm.xlu1 %482, %v302_v61  }
 0x217   :  { %326 = vperm.xlu1 %482, %v303_v62   ;;  %v336_v62 = vsel %vm328_vm7, %v629_v38, 0.0 }
 0x218   :  { %v678_v63 = vpop.xlane.xlu0 %202 }
 0x219   :  { %v223_v0 = vsub.f32 %v625_v34, %v678_v63  ;;  %v692_v7 = vpop.xlane.xlu1 %199 }
 0x21a   :  { %v222_v11 = vsub.f32 %v629_v38, %v692_v7 }
 0x21b   :  { %v232_v1 = vmul.f32 1.442695, %v223_v0  ;;  %v344_v0 = vsel %vm24_vm0, %v336_v62, 0.0 }
 0x21c   :  { %v682_v2 = vpop.xlane.xlu0 %214  ;;  %v230_v16 = vmul.f32 1.442695, %v222_v11 }
 0x21d   :  { %490 = vpow2.f32 %v232_v1  ;;  %v227_v4 = vsub.f32 %v627_v36, %v682_v2  ;;  %v701_v17 = vpop.xlane.xlu1 %211 }
 0x21e   :  { %v226_v40 = vsub.f32 %v631_v39, %v701_v17 }
 0x21f   :  { %v240_v8 = vmul.f32 1.442695, %v227_v4 }
 0x220   :  { %v688_v5 = vpop.xlane.xlu0 %208  ;;  %v238_v42 = vmul.f32 1.442695, %v226_v40 }
 0x221   :  { %v225_v6 = vsub.f32 %v639_v45, %v688_v5  ;;  %v312_v22 = vpop.permute.xlu1 %311 }
 0x222   :  { %vm330_vm8 = vcmp.eq.s32.totalorder %v704_v24, %v312_v22 }
 0x223   :  { %v236_v9 = vmul.f32 1.442695, %v225_v6  ;;  %v338_v1 = vsel %vm330_vm8, %v661_v56, 0.0 }
 0x224   :  { %v694_v10 = vpop.xlane.xlu0 %220 }
 0x225   :  { %492 = vpow2.f32 %v236_v9  ;;  %v229_v12 = vsub.f32 %v643_v49, %v694_v10  ;;  %v315_v28 = vpop.permute.xlu1 %314 }
 0x226   :  { %494 = vpow2.f32 %v240_v8  ;;  %vm331_vm4 = vcmp.eq.s32.totalorder %v704_v24, %v315_v28 }
 0x227   :  { %v491_v13 = vpop.eup %490  ;;  %v244_v14 = vmul.f32 1.442695, %v229_v12  ;;  %v339_v33 = vsel %vm331_vm4, %v639_v45, 0.0 }
 0x228   :  { %v249_v15 = vsel %vm24_vm0, %v491_v13, 0.0  ;;  %v353_v35 = vsel %vm24_vm0, %v339_v33, 0.0 }
 0x229   :  { %250 = vadd.xlane.f32.xlu0 %v249_v15  ;;  %496 = vpow2.f32 %v244_v14  ;;  %v318_v37 = vpop.permute.xlu1 %317 }
 0x22a   :  { %498 = vpow2.f32 %v230_v16  ;;  %vm332_vm9 = vcmp.eq.s32.totalorder %v704_v24, %v318_v37 }
 0x22b   :  { %v340_v3 = vsel %vm332_vm9, %v631_v39, 0.0 }
 0x22c   :  { %v309_v23 = vpop.permute.xlu0 %308  ;;  %v356_v4 = vsel %vm24_vm0, %v340_v3, 0.0 }
 0x22d   :  { %vm329_vm3 = vcmp.eq.s32.totalorder %v704_v24, %v309_v23 }
 0x22e   :  { %v337_v30 = vsel %vm329_vm3, %v625_v34, 0.0 }
 0x22f   :  { %v493_v18 = vpop.eup %492  ;;  %v347_v32 = vsel %vm24_vm0, %v337_v30, 0.0 }
 0x230   :  { %v255_v20 = vsel %vm24_vm0, %v493_v18, 0.0  ;;  %v495_v21 = vpop.eup %494 }
 0x231   :  { %256 = vadd.xlane.f32.xlu0 %v255_v20  ;;  %v261_v25 = vsel %vm24_vm0, %v495_v21, 0.0 }
 0x233   :  { %v497_v26 = vpop.eup %496 }
 0x234   :  { %v499_v27 = vpop.eup %498  ;;  %v267_v29 = vsel %vm24_vm0, %v497_v26, 0.0  ;;  %v377_v26 = vld [vmem:[%s802_s3 + $0x8] sm:$0xff] }
 0x235   :  { %262 = vadd.xlane.f32.xlu0 %v261_v25  ;;  %v246_v31 = vsel %vm24_vm0, %v499_v27, 0.0 }
 0x239   :  { %268 = vadd.xlane.f32.xlu0 %v267_v29 }
 0x23b   :  { %247 = vadd.xlane.f32.xlu1 %v246_v31 }
 0x23d   :  { %348 = vadd.xlane.f32.xlu0 %v347_v32  ;;  %v376_v32 = vld [vmem:[%s802_s3] sm:$0xff] }
 0x241   :  { %354 = vadd.xlane.f32.xlu0 %v353_v35 }
 0x25a   :  { %v717_v41 = vpop.xlane.xlu1 %205 }
 0x25b   :  { %v224_v34 = vsub.f32 %v661_v56, %v717_v41 }
 0x25d   :  { %v234_v43 = vmul.f32 1.442695, %v224_v34 }
 0x25e   :  { %v321_v44 = vpop.permute.xlu1 %320 }
 0x25f   :  { %500 = vpow2.f32 %v234_v43  ;;  %vm333_vm5 = vcmp.eq.s32.totalorder %v704_v24, %v321_v44 }
 0x260   :  { %v341_v45 = vsel %vm333_vm5, %v627_v36, 0.0  ;;  %502 = vpow2.f32 %v238_v42 }
 0x261   :  { %v359_v46 = vsel %vm24_vm0, %v341_v45, 0.0  ;;  %v378_v45 = vld [vmem:[%s802_s3 + $0x10] sm:$0xff] }
 0x262   :  { %360 = vadd.xlane.f32.xlu0 %v359_v46 }
 0x269   :  { %v501_v47 = vpop.eup %500 }
 0x26a   :  { %v252_v48 = vsel %vm24_vm0, %v501_v47, 0.0  ;;  %v503_v50 = vpop.eup %502 }
 0x26b   :  { %253 = vadd.xlane.f32.xlu1 %v252_v48  ;;  %v258_v51 = vsel %vm24_vm0, %v503_v50, 0.0 }
 0x26f   :  { %259 = vadd.xlane.f32.xlu1 %v258_v51 }
 0x28f   :  { %v726_v52 = vpop.xlane.xlu1 %217 }
 0x290   :  { %v228_v53 = vsub.f32 %v668_v59, %v726_v52 }
 0x292   :  { %v242_v54 = vmul.f32 1.442695, %v228_v53 }
 0x293   :  { %v324_v55 = vpop.permute.xlu1 %323 }
 0x294   :  { %504 = vpow2.f32 %v242_v54  ;;  %vm334_vm10 = vcmp.eq.s32.totalorder %v704_v24, %v324_v55 }
 0x295   :  { %v342_v38 = vsel %vm334_vm10, %v668_v59, 0.0 }
 0x296   :  { %v362_v6 = vsel %vm24_vm0, %v342_v38, 0.0 }
 0x297   :  { %v327_v36 = vpop.permute.xlu1 %326 }
 0x298   :  { %vm335_vm6 = vcmp.eq.s32.totalorder %v704_v24, %v327_v36 }
 0x299   :  { %v343_v57 = vsel %vm335_vm6, %v643_v49, 0.0  ;;  %v350_v49 = vsel %vm24_vm0, %v338_v1, 0.0 }
 0x29a   :  { %v365_v58 = vsel %vm24_vm0, %v343_v57, 0.0 }
 0x29b   :  { %366 = vadd.xlane.f32.xlu0 %v365_v58  ;;  %v381_v58 = vld [vmem:[%s802_s3 + $0x28] sm:$0xff] }
 0x29e   :  { %v505_v60 = vpop.eup %504 }
 0x29f   :  { %v264_v61 = vsel %vm24_vm0, %v505_v60, 0.0 }
 0x2a0   :  { %265 = vadd.xlane.f32.xlu1 %v264_v61 }
 0x2a4   :  { %345 = vadd.xlane.f32.xlu1 %v344_v0 }
 0x2a8   :  { %351 = vadd.xlane.f32.xlu1 %v350_v49 }
 0x2ac   :  { %357 = vadd.xlane.f32.xlu1 %v356_v4 }
 0x2b0   :  { %363 = vadd.xlane.f32.xlu1 %v362_v6 }
 0x2b6   :  { %v251_v8 = vpop.xlane.xlu0 %250 }
 0x2b7   :  { %506 = vlog2.f32 %v251_v8 }
 0x2be   :  { %v257_v9 = vpop.xlane.xlu0 %256 }
 0x2bf   :  { %508 = vlog2.f32 %v257_v9 }
 0x2c1   :  { %v507_v14 = vpop.eup %506 }
 0x2c2   :  { %v263_v12 = vpop.xlane.xlu0 %262  ;;  %v273_v59 = vmul.f32 0.6931472, %v507_v14 }
 0x2c4   :  { %v287_v22 = vadd.f32 %v273_v59, %v678_v63 }
 0x2c6   :  { %v269_v13 = vpop.xlane.xlu0 %268 }
 0x2c8   :  { %v248_v56 = vpop.xlane.xlu1 %247 }
 0x2c9   :  { %510 = vlog2.f32 %v248_v56  ;;  %v509_v15 = vpop.eup %508  ;;  %v383_v56 = vld [vmem:[%s802_s3 + $0x38] sm:$0xff] }
 0x2ca   :  { %v349_v18 = vpop.xlane.xlu0 %348  ;;  %v277_v19 = vmul.f32 0.6931472, %v509_v15 }
 0x2cb   :  { %v369_v25 = vsub.f32 %v287_v22, %v349_v18 }
 0x2cc   :  { %v289_v27 = vadd.f32 %v277_v19, %v688_v5 }
 0x2cd   :  { %v385_v40 = vmul.f32 %v377_v26, %v369_v25 }
 0x2ce   :  { %v355_v31 = vpop.xlane.xlu0 %354 }
 0x2cf   :  { %v371_v34 = vsub.f32 %v289_v27, %v355_v31  ;;  %v394_v53 = vsel %vm392_vm11, %v385_v40, 0.0 }
 0x2d3   :  { %v511_v16 = vpop.eup %510 }
 0x2d4   :  { %v271_v20 = vmul.f32 0.6931472, %v511_v16 }
 0x2d6   :  { %v286_v29 = vadd.f32 %v271_v20, %v692_v7  ;;  %v379_v7 = vld [vmem:[%s802_s3 + $0x18] sm:$0xff] }
 0x2ef   :  { %v361_v44 = vpop.xlane.xlu0 %360 }
 0x2f8   :  { %v254_v11 = vpop.xlane.xlu1 %253 }
 0x2f9   :  { %512 = vlog2.f32 %v254_v11 }
 0x2fa   :  { %514 = vlog2.f32 %v263_v12 }
 0x2fc   :  { %v260_v39 = vpop.xlane.xlu1 %259 }
 0x2fd   :  { %516 = vlog2.f32 %v260_v39 }
 0x2fe   :  { %518 = vlog2.f32 %v269_v13 }
 0x303   :  { %v513_v21 = vpop.eup %512 }
 0x304   :  { %v515_v24 = vpop.eup %514  ;;  %v275_v28 = vmul.f32 0.6931472, %v513_v21 }
 0x305   :  { %v281_v33 = vmul.f32 0.6931472, %v515_v24 }
 0x306   :  { %v288_v5 = vadd.f32 %v275_v28, %v717_v41  ;;  %v387_v41 = vmul.f32 %v379_v7, %v371_v34 }
 0x307   :  { %v517_v30 = vpop.eup %516  ;;  %v291_v48 = vadd.f32 %v281_v33, %v682_v2  ;;  %v380_v2 = vld [vmem:[%s802_s3 + $0x20] sm:$0xff] }
 0x308   :  { %v519_v37 = vpop.eup %518  ;;  %v279_v42 = vmul.f32 0.6931472, %v517_v30  ;;  %v398_v38 = vsel %vm392_vm11, %v387_v41, 0.0 }
 0x309   :  { %v285_v47 = vmul.f32 0.6931472, %v519_v37  ;;  %v373_v55 = vsub.f32 %v291_v48, %v361_v44 }
 0x30a   :  { %v290_v57 = vadd.f32 %v279_v42, %v701_v17 }
 0x30b   :  { %v293_v1 = vadd.f32 %v285_v47, %v694_v10  ;;  %v389_v6 = vmul.f32 %v381_v58, %v373_v55  ;;  %v382_v10 = vld [vmem:[%s802_s3 + $0x30] sm:$0xff]  ;;  %s547_s3 = smov [#allocation2]  }
 0x30c   :  { %s422_s12 = sshll.u32 %s547_s3, 4  ;;  %s423_s12 = int_to_ptr.vmem [resolvable:$true] %s422_s12 }
 0x30d   :  { %s522_s13 = scalar_lea.vmem %s423_s12, 16  ;;  %s526_s14 = scalar_lea.vmem %s423_s12, 32 }
 0x30e   :  { %p523_p0 = scmp.ne.s32.totalorder %s423_s12, %s522_s13  ;;  %p527_p1 = scmp.lt.s32.totalorder %s423_s12, %s423_s12 }
 0x30f   :  { %p528_p2 = scmp.lt.s32.totalorder %s526_s14, %s522_s13 }
 0x311   :  { %p529_p3 = por %p528_p2, %p527_p1 }
 0x313   :  { %p530_p4 = pnand %p529_p3, %p523_p0 }
 0x328   :  { %v367_v60 = vpop.xlane.xlu0 %366 }
 0x329   :  { %v375_v8 = vsub.f32 %v293_v1, %v367_v60 }
 0x32b   :  { %v391_v15 = vmul.f32 %v383_v56, %v375_v8 }
 0x32d   :  { %v266_v23 = vpop.xlane.xlu1 %265  ;;  %v406_v20 = vsel %vm392_vm11, %v391_v15, 0.0 }
 0x32e   :  { %520 = vlog2.f32 %v266_v23 }
 0x331   :  { %v346_v63 = vpop.xlane.xlu1 %345 }
 0x332   :  { %v368_v35 = vsub.f32 %v286_v29, %v346_v63 }
 0x334   :  { %v384_v43 = vmul.f32 %v376_v32, %v368_v35 }
 0x335   :  { %v352_v46 = vpop.xlane.xlu1 %351 }
 0x336   :  { %v393_v50 = vsel %vm392_vm11, %v384_v43, 0.0  ;;  %v370_v51 = vsub.f32 %v288_v5, %v352_v46 }
 0x337   :  { %v395_v62 = vadd.f32 %v394_v53, %v393_v50 }
 0x338   :  { %v521_v54 = vpop.eup %520  ;;  %v386_v36 = vmul.f32 %v378_v45, %v370_v51 }
 0x339   :  { %v283_v61 = vmul.f32 0.6931472, %v521_v54  ;;  %v358_v0 = vpop.xlane.xlu1 %357 }
 0x33a   :  { %v396_v49 = vsel %vm392_vm11, %v386_v36, 0.0  ;;  %v372_v3 = vsub.f32 %v290_v57, %v358_v0 }
 0x33b   :  { %v397_v4 = vadd.f32 %v396_v49, %v395_v62  ;;  %v292_v17 = vadd.f32 %v283_v61, %v726_v52  ;;  %v402_v52 = vsel %vm392_vm11, %v389_v6, 0.0 }
 0x33c   :  { %v388_v9 = vmul.f32 %v380_v2, %v372_v3 }
 0x33d   :  { %v399_v11 = vadd.f32 %v398_v38, %v397_v4  ;;  %v364_v12 = vpop.xlane.xlu1 %363 }
 0x33e   :  { %v400_v39 = vsel %vm392_vm11, %v388_v9, 0.0  ;;  %v374_v13 = vsub.f32 %v292_v17, %v364_v12 }
 0x33f   :  { %v401_v14 = vadd.f32 %v400_v39, %v399_v11 }
 0x340   :  { %v390_v16 = vmul.f32 %v382_v10, %v374_v13 }
 0x341   :  { %v403_v59 = vadd.f32 %v402_v52, %v401_v14 }
 0x342   :  { %v404_v18 = vsel %vm392_vm11, %v390_v16, 0.0 }
 0x343   :  { %v405_v19 = vadd.f32 %v404_v18, %v403_v59 }
 0x345   :  { %v407_v21 = vadd.f32 %v406_v20, %v405_v19 }
 0x347   :  { %v408_v22 = vrot.slane %v407_v21, 4 }
 0x349   :  { %v409_v23 = vadd.f32 %v408_v22, %v407_v21 }
 0x34b   :  { %v410_v24 = vrot.slane %v409_v23, 2 }
 0x34d   :  { %v411_v25 = vadd.f32 %v410_v24, %v409_v23 }
 0x34f   :  { %v412_v26 = vrot.slane %v411_v25, 1 }
 0x351   :  { %v413_v27 = vadd.f32 %v412_v26, %v411_v25 }
 0x353   :  { %415 = vst.msk [vmem:[#allocation2] sm:$0x1] %vm414_vm12, %v413_v27 }
 0x354   :  { %533 = shalt.err (!%p530_p4)
}
 0x355   :  { %s534_s17 = scalar_lea.hbm %s803_s4, 16 }
 0x356   :  { %p535_p5 = scmp.ne.s32.totalorder %s803_s4, %s534_s17  ;;  %p538_p6 = scmp.lt.u32.totalorder %s534_s17, %s803_s4 }
 0x358   :  { %p540_p7 = pnand %p538_p6, %p535_p5 }
 0x35a   :  { %543 = shalt.err (!%p540_p7)
}
 0x35b   :  { %425 = dma.vmem_to_hbm [thread:$0]  %s423_s12, 16, %s803_s4, [#allocation3]  }
 0x35c   :  { %544 = dma.done.wait [#allocation3], 16  }
 0x35d   :  { %545 = vsyncadd [#allocation3], 4294967280 }
 0x35e   :  { %429 = vsyncpa [#allocation3], 1 }

</bundles_post_ra>
